<compile_context>
chip_gen: v5e
topology: v5e:2x2
jax: 0.10.0
libtpu: 0.0.40
codegen_flags: <defaults>
</compile_context>

<pallas_src>
import functools

import jax
import jax.numpy as jnp
import numpy as np
from jax.experimental import pallas as pl
from jax.experimental.pallas import tpu as pltpu

EPS = 1e-5
_LANE = 128


def _round_up(v, m):
  return ((v + m - 1) // m) * m


def _choose_tile_m(n_seqs, seq_len, target):
  """Row-tile size: multiple of seq_len (k=3 taps never cross a tile), divides
  M exactly, and a multiple of 16 sublanes (bf16 tiling) when more than one
  tile is used."""
  m = n_seqs * seq_len
  if m <= target:
    return m
  cands = [d * seq_len for d in range(1, n_seqs + 1)
           if n_seqs % d == 0 and (d * seq_len) % 16 == 0]
  small = [t for t in cands if t <= target]
  if small:
    return max(small)
  if cands:
    return min(cands)
  return m   # TODO(synk): pathological shapes fall back to a single tile.


def _vmem_limit_bytes(need):
  # Generation-aware cap: ~112 MiB usable on v5e/v6e (128 MiB physical),
  # ~48 MiB on v7x (64 MiB physical).  Fallback if the query is unavailable.
  try:
    cap = pltpu.get_tpu_info().vmem_capacity_bytes
  except Exception:
    cap = 64 * 2 ** 20
  return int(np.clip(need, 32 * 2 ** 20, cap - 16 * 2 ** 20))


# ----------------------------- kernel bodies ---------------------------------
def _emit_stats(h_f32, stats_ref):
  # Per-tile BatchNorm partials: per-channel sum and centered second moment.
  tm = h_f32.shape[0]
  s = jnp.sum(h_f32, axis=0, keepdims=True)                      # (1, C)
  mu = s * (1.0 / tm)
  m2 = jnp.sum(jnp.square(h_f32 - mu), axis=0, keepdims=True)    # (1, C)
  stats_ref[0] = jnp.concatenate([s, m2], axis=0)                # (2, C)


def _bn_relu_bf16(h_ref, scale_ref, shift_ref):
  a = h_ref[...].astype(jnp.float32) * scale_ref[...] + shift_ref[...]
  return jnp.maximum(a, 0.0).astype(jnp.bfloat16)


def _conv1x1_stats_kernel(apply_bn, *refs):
  # [bn+relu ->] 1x1 conv -> bf16 out + BN partial stats for the NEXT BN.
  if apply_bn:
    h_ref, scale_ref, shift_ref, w_ref, o_ref, stats_ref = refs
    a = _bn_relu_bf16(h_ref, scale_ref, shift_ref)
  else:
    h_ref, w_ref, o_ref, stats_ref = refs
    a = h_ref[...]                                   # already bf16
  h = jnp.dot(a, w_ref[...], preferred_element_type=jnp.float32)
  o_ref[...] = h.astype(jnp.bfloat16)
  _emit_stats(h, stats_ref)


def _conv3tap_stats_kernel(seq_len, *refs):
  # bn+relu -> k=3 pad=1 conv as three accumulating MXU dots.  Taps are built
  # with cheap XLU sublane rolls + per-row sequence-boundary masks; row tiles
  # are sequence-aligned so no tap ever crosses a tile.
  h_ref, scale_ref, shift_ref, w_ref, o_ref, stats_ref = refs
  a = _bn_relu_bf16(h_ref, scale_ref, shift_ref)     # (tm, C) bf16
  tm = a.shape[0]
  row = jax.lax.broadcasted_iota(jnp.int32, (tm, 1), 0)
  a_prev = jnp.where((row % seq_len) != 0,
                     pltpu.roll(a, 1, 0), 0.0).astype(jnp.bfloat16)
  a_next = jnp.where((row % seq_len) != (seq_len - 1),
                     pltpu.roll(a, tm - 1, 0), 0.0).astype(jnp.bfloat16)
  h = jnp.dot(a_prev, w_ref[0], preferred_element_type=jnp.float32)
  h = h + jnp.dot(a, w_ref[1], preferred_element_type=jnp.float32)
  h = h + jnp.dot(a_next, w_ref[2], preferred_element_type=jnp.float32)
  o_ref[...] = h.astype(jnp.bfloat16)
  _emit_stats(h, stats_ref)


def _final_kernel(has_res, *refs):
  # bn3 + relu + residual add (identity or 1x1 projection), f32 output.
  if has_res:
    h_ref, scale_ref, shift_ref, x_ref, wres_ref, bres_ref, o_ref = refs
    res = jnp.dot(x_ref[...], wres_ref[...],
                  preferred_element_type=jnp.float32) + bres_ref[...]
  else:
    h_ref, scale_ref, shift_ref, x_ref, o_ref = refs
    res = x_ref[...].astype(jnp.float32)
  y = h_ref[...].astype(jnp.float32) * scale_ref[...] + shift_ref[...]
  o_ref[...] = jnp.maximum(y, 0.0) + res


# ----------------------------- call plumbing ---------------------------------
def _row_map(i):
  return (i, 0)


def _const2_map(i):
  return (0, 0)


def _const3_map(i):
  return (0, 0, 0)


def _stats_map(i):
  return (i, 0, 0)


def _stage_call(kernel, grid_m, args, in_specs, out_shape, out_specs,
                flops, vmem_need):
  shapes = out_shape if isinstance(out_shape, (tuple, list)) else (out_shape,)
  bytes_accessed = sum(int(np.prod(a.shape)) * a.dtype.itemsize for a in args)
  bytes_accessed += sum(int(np.prod(s.shape)) * np.dtype(s.dtype).itemsize
                        for s in shapes)
  return pl.pallas_call(
      kernel,
      grid=(grid_m,),
      in_specs=in_specs,
      out_shape=out_shape,
      out_specs=out_specs,
      compiler_params=pltpu.CompilerParams(
          dimension_semantics=("parallel",),
          vmem_limit_bytes=_vmem_limit_bytes(vmem_need)),
      cost_estimate=pl.CostEstimate(flops=int(flops), transcendentals=0,
                                    bytes_accessed=int(bytes_accessed)),
  )(*args)


def _bn_affine(stats, m_rows, tile_m, gamma, beta, c_p):
  """Combine per-tile {sum, centered-M2} partials (Chan) -> scale/shift rows."""
  sums = stats[:, 0, :]                              # (grid_m, C_p)
  m2s = stats[:, 1, :]                               # (grid_m, C_p)
  mean = jnp.sum(sums, axis=0) / m_rows
  tile_mean = sums / tile_m
  m2 = jnp.sum(m2s, axis=0) + tile_m * jnp.sum(
      jnp.square(tile_mean - mean[None, :]), axis=0)
  var = jnp.maximum(m2 / m_rows, 0.0)
  g = jnp.pad(gamma.astype(jnp.float32), (0, c_p - gamma.shape[0]))
  b = jnp.pad(beta.astype(jnp.float32), (0, c_p - beta.shape[0]))
  scale = g * jax.lax.rsqrt(var + EPS)
  shift = b - mean * scale
  return scale.reshape(1, c_p), shift.reshape(1, c_p)


# ----------------------------- public wrapper --------------------------------
def init_bottleneck_params(key, c_in, c_med, c_out):
  """Deterministic PyTorch-layout parameters (Conv1d weight: (Cout, Cin, K))."""
  ks = jax.random.split(key, 8)

  def u(k, shape, fan_in):
    bound = 1.0 / (fan_in ** 0.5)
    return jax.random.uniform(k, shape, jnp.float32, -bound, bound)

  p = dict(
      conv1_w=u(ks[0], (c_med, c_in, 1), c_in),
      conv1_b=u(ks[1], (c_med,), c_in),
      bn1_g=jnp.ones((c_med,), jnp.float32),
      bn1_b=jnp.zeros((c_med,), jnp.float32),
      conv2_w=u(ks[2], (c_med, c_med, 3), c_med * 3),
      conv2_b=u(ks[3], (c_med,), c_med * 3),
      bn2_g=jnp.ones((c_med,), jnp.float32),
      bn2_b=jnp.zeros((c_med,), jnp.float32),
      conv3_w=u(ks[4], (c_out, c_med, 1), c_med),
      conv3_b=u(ks[5], (c_out,), c_med),
      bn3_g=jnp.ones((c_out,), jnp.float32),
      bn3_b=jnp.zeros((c_out,), jnp.float32),
  )
  if c_in != c_out:
    p["res_w"] = u(ks[6], (c_out, c_in, 1), c_in)
    p["res_b"] = u(ks[7], (c_out,), c_in)
  return p


def bottleneck_forward(x, params, *, downsample=False, tile_rows=1024):
  """x: (N, C_in, L) float32, PyTorch NCL layout. Returns (N, C_out, L_out)."""
  n, c_in, _ = x.shape
  stride = 2 if downsample else 1
  c_med = params["conv1_w"].shape[0]
  c_out = params["conv3_w"].shape[0]
  has_res = "res_w" in params
  if not has_res and (c_in != c_out or stride != 1):
    raise ValueError("identity residual requires C_in == C_out and stride 1 "
                     "(same constraint as the PyTorch module's forward).")

  # stride of the first 1x1 conv (and the residual projection) == subsampling
  x_s = x[:, :, ::stride]                              # (N, C_in, L_out)
  ls = x_s.shape[-1]
  m = n * ls
  tile_m = _choose_tile_m(n, ls, tile_rows)
  assert m % tile_m == 0 and tile_m % ls == 0
  grid_m = m // tile_m

  c_in_p = _round_up(c_in, _LANE)
  c_med_p = _round_up(c_med, _LANE)
  c_out_p = _round_up(c_out, _LANE)

  # NLC-flat, lane-dense (128-padded), bf16 activation slab (padded channels
  # stay exactly zero end-to-end).
  x2 = jnp.transpose(x_s, (0, 2, 1)).reshape(m, c_in)
  x2 = jnp.pad(x2, ((0, 0), (0, c_in_p - c_in))).astype(jnp.bfloat16)

  def pad_w(w2d, r, c):
    w2d = w2d.astype(jnp.float32)
    return jnp.pad(w2d, ((0, r - w2d.shape[0]),
                         (0, c - w2d.shape[1]))).astype(jnp.bfloat16)

  # Conv biases b1/b2/b3 are dropped: a per-channel constant added before a
  # training-mode BatchNorm cancels exactly (shifts the batch mean only).
  w1 = pad_w(params["conv1_w"][:, :, 0].T, c_in_p, c_med_p)          # (Cin_p, Cmed_p)
  w2 = jnp.stack([pad_w(params["conv2_w"][:, :, k].T, c_med_p, c_med_p)
                  for k in range(3)], axis=0)                        # (3, Cmed_p, Cmed_p)
  w3 = pad_w(params["conv3_w"][:, :, 0].T, c_med_p, c_out_p)         # (Cmed_p, Cout_p)

  row_in = pl.BlockSpec((tile_m, c_in_p), _row_map)
  row_med = pl.BlockSpec((tile_m, c_med_p), _row_map)
  row_out = pl.BlockSpec((tile_m, c_out_p), _row_map)
  sc_med = pl.BlockSpec((1, c_med_p), _const2_map)
  sc_out = pl.BlockSpec((1, c_out_p), _const2_map)

  def h_shape(c):
    return jax.ShapeDtypeStruct((m, c), jnp.bfloat16)

  def st_shape(c):
    return jax.ShapeDtypeStruct((grid_m, 2, c), jnp.float32)

  def st_spec(c):
    return pl.BlockSpec((1, 2, c), _stats_map)

  # Rough per-stage VMEM need (double-buffered row tiles + resident weights).
  tile_bytes = tile_m * (c_in_p + 3 * c_med_p + c_out_p) * 2 + tile_m * c_out_p * 4
  w_bytes = (c_in_p * c_med_p + 3 * c_med_p * c_med_p + c_med_p * c_out_p
             + c_in_p * c_out_p) * 2
  vmem_need = 4 * tile_bytes + 2 * w_bytes + (1 << 20)

  # ---- stage 1: conv1 (1x1) ----
  h1, st1 = _stage_call(
      functools.partial(_conv1x1_stats_kernel, False), grid_m,
      [x2, w1],
      [row_in, pl.BlockSpec(w1.shape, _const2_map)],
      (h_shape(c_med_p), st_shape(c_med_p)),
      (row_med, st_spec(c_med_p)),
      flops=2 * m * c_in_p * c_med_p, vmem_need=vmem_need)
  sc1, sh1 = _bn_affine(st1, m, tile_m, params["bn1_g"], params["bn1_b"], c_med_p)

  # ---- stage 2: bn1 + relu + conv2 (k=3, pad=1) ----
  h2, st2 = _stage_call(
      functools.partial(_conv3tap_stats_kernel, ls), grid_m,
      [h1, sc1, sh1, w2],
      [row_med, sc_med, sc_med, pl.BlockSpec(w2.shape, _const3_map)],
      (h_shape(c_med_p), st_shape(c_med_p)),
      (row_med, st_spec(c_med_p)),
      flops=6 * m * c_med_p * c_med_p, vmem_need=vmem_need)
  sc2, sh2 = _bn_affine(st2, m, tile_m, params["bn2_g"], params["bn2_b"], c_med_p)

  # ---- stage 3: bn2 + relu + conv3 (1x1) ----
  h3, st3 = _stage_call(
      functools.partial(_conv1x1_stats_kernel, True), grid_m,
      [h2, sc2, sh2, w3],
      [row_med, sc_med, sc_med, pl.BlockSpec(w3.shape, _const2_map)],
      (h_shape(c_out_p), st_shape(c_out_p)),
      (row_out, st_spec(c_out_p)),
      flops=2 * m * c_med_p * c_out_p, vmem_need=vmem_need)
  sc3, sh3 = _bn_affine(st3, m, tile_m, params["bn3_g"], params["bn3_b"], c_out_p)

  # ---- stage 4: bn3 + relu + residual ----
  if has_res:
    wres = pad_w(params["res_w"][:, :, 0].T, c_in_p, c_out_p)
    bres = jnp.pad(params["res_b"].astype(jnp.float32).reshape(1, -1),
                   ((0, 0), (0, c_out_p - c_out)))
    out2 = _stage_call(
        functools.partial(_final_kernel, True), grid_m,
        [h3, sc3, sh3, x2, wres, bres],
        [row_out, sc_out, sc_out, row_in,
         pl.BlockSpec(wres.shape, _const2_map), sc_out],
        jax.ShapeDtypeStruct((m, c_out_p), jnp.float32),
        row_out,
        flops=2 * m * c_in_p * c_out_p, vmem_need=vmem_need)
  else:
    out2 = _stage_call(
        functools.partial(_final_kernel, False), grid_m,
        [h3, sc3, sh3, x2],
        [row_out, sc_out, sc_out, row_in],
        jax.ShapeDtypeStruct((m, c_out_p), jnp.float32),
        row_out,
        flops=2 * m * c_out_p, vmem_need=vmem_need)

  out2 = out2[:, :c_out]                               # drop padded channels
  return jnp.transpose(out2.reshape(n, ls, c_out), (0, 2, 1))


# -------------------- pure-JAX reference (for checking) ----------------------
def _conv1d_ref(x, w, b, stride=1, padding=0):
  y = jax.lax.conv_general_dilated(
      x, w, window_strides=(stride,), padding=[(padding, padding)],
      dimension_numbers=("NCH", "OIH", "NCH"),
      precision=jax.lax.Precision.HIGHEST)
  return y + b.reshape(1, -1, 1)


def _bn_relu_ref(x, g, b):
  mean = jnp.mean(x, axis=(0, 2), keepdims=True)
  var = jnp.mean(jnp.square(x - mean), axis=(0, 2), keepdims=True)
  y = (x - mean) * jax.lax.rsqrt(var + EPS) * g.reshape(1, -1, 1) + b.reshape(1, -1, 1)
  return jnp.maximum(y, 0.0)


def bottleneck_reference(x, p, *, downsample=False):
  stride = 2 if downsample else 1
  h = _conv1d_ref(x, p["conv1_w"], p["conv1_b"], stride=stride)
  h = _bn_relu_ref(h, p["bn1_g"], p["bn1_b"])
  h = _conv1d_ref(h, p["conv2_w"], p["conv2_b"], padding=1)
  h = _bn_relu_ref(h, p["bn2_g"], p["bn2_b"])
  h = _conv1d_ref(h, p["conv3_w"], p["conv3_b"])
  h = _bn_relu_ref(h, p["bn3_g"], p["bn3_b"])
  res = _conv1d_ref(x, p["res_w"], p["res_b"], stride=stride) if "res_w" in p else x
  return h + res


if __name__ == "__main__":
  key = jax.random.PRNGKey(0)
  k_xa, k_pa, k_xb, k_pb, k_xc, k_pc = jax.random.split(key, 6)

  # Config A: projection residual (C_in != C_out), stride 1, single row tile.
  N, C_IN, C_MED, C_OUT, L = 2, 4, 8, 16, 16
  xa = jax.random.normal(k_xa, (N, C_IN, L), jnp.float32)
  pa = init_bottleneck_params(k_pa, C_IN, C_MED, C_OUT)
  out_a = jax.block_until_ready(bottleneck_forward(xa, pa, downsample=False))
  ref_a = bottleneck_reference(xa, pa, downsample=False)
  assert out_a.shape == ref_a.shape == (N, C_OUT, L)
  np.testing.assert_allclose(np.asarray(out_a), np.asarray(ref_a),
                             rtol=2e-2, atol=3e-2)

  # Config B: identity residual (C_in == C_out).  PyTorch's identity path is
  # only shape-consistent at stride 1, so downsample=False here.
  N2, C2, C2_MED, L2 = 2, 16, 8, 16
  xb = jax.random.normal(k_xb, (N2, C2, L2), jnp.float32)
  pb = init_bottleneck_params(k_pb, C2, C2_MED, C2)        # no res_layer
  out_b = jax.block_until_ready(bottleneck_forward(xb, pb, downsample=False))
  ref_b = bottleneck_reference(xb, pb, downsample=False)
  assert out_b.shape == ref_b.shape == (N2, C2, L2)
  np.testing.assert_allclose(np.asarray(out_b), np.asarray(ref_b),
                             rtol=2e-2, atol=3e-2)

  # Config C: projection residual + downsample (stride 2); tile_rows=16 forces
  # a 2-tile grid to exercise the streamed cross-tile BatchNorm path.
  N3, C3_IN, C3_MED, C3_OUT, L3 = 2, 8, 8, 32, 32
  xc = jax.random.normal(k_xc, (N3, C3_IN, L3), jnp.float32)
  pc = init_bottleneck_params(k_pc, C3_IN, C3_MED, C3_OUT)
  out_c = jax.block_until_ready(
      bottleneck_forward(xc, pc, downsample=True, tile_rows=16))
  ref_c = bottleneck_reference(xc, pc, downsample=True)
  assert out_c.shape == ref_c.shape == (N3, C3_OUT, L3 // 2)
  np.testing.assert_allclose(np.asarray(out_c), np.asarray(ref_c),
                             rtol=2e-2, atol=3e-2)

  print("KERNEL_OK")
</pallas_src>

<mosaic_0001>
module attributes {stable_mosaic.version = 11 : i64} {
  func.func @_conv1x1_stats_kernel(%arg0: i32, %arg1: memref<32x128xbf16, #tpu.memory_space<vmem>>, %arg2: memref<128x128xbf16, #tpu.memory_space<vmem>>, %arg3: memref<32x128xbf16, #tpu.memory_space<vmem>>, %arg4: memref<1x2x128xf32, #tpu.memory_space<vmem>>) attributes {dimension_semantics = [#tpu.dimension_semantics<parallel>], iteration_bounds = array<i64: 1>, scalar_prefetch = 0 : i64, scratch_operands = 0 : i64, tpu.core_type = #tpu.core_type<tc>, window_params = [{transform_indices = @transform_0, window_bounds = array<i64: 32, 128>}, {pipeline_mode = #tpu.pipeline_mode<synchronous>, transform_indices = @transform_1, window_bounds = array<i64: 128, 128>}, {transform_indices = @transform_2, window_bounds = array<i64: 32, 128>}, {transform_indices = @transform_3, window_bounds = array<i64: 1, 2, 128>}]} {
    %c0 = arith.constant 0 : index
    %c0_0 = arith.constant 0 : index
    %0 = vector.load %arg1[%c0, %c0_0] : memref<32x128xbf16, #tpu.memory_space<vmem>>, vector<32x128xbf16>
    %c0_1 = arith.constant 0 : index
    %c0_2 = arith.constant 0 : index
    %1 = vector.load %arg2[%c0_1, %c0_2] : memref<128x128xbf16, #tpu.memory_space<vmem>>, vector<128x128xbf16>
    %cst = arith.constant dense<0.000000e+00> : vector<32x128xf32>
    %2 = tpu.matmul %0, %1, %cst {dimension_numbers = #tpu.dot_dimension_numbers<[1], [0], [0], [1], [0, 0, 1, 1], [], []>} : vector<32x128xbf16>, vector<128x128xbf16>, vector<32x128xf32> -> vector<32x128xf32>
    %3 = arith.truncf %2 : vector<32x128xf32> to vector<32x128xbf16>
    %c0_3 = arith.constant 0 : index
    %c0_4 = arith.constant 0 : index
    %4 = vector.load %arg3[%c0_3, %c0_4] : memref<32x128xbf16, #tpu.memory_space<vmem>>, vector<32x128xbf16>
    tpu.vector_store %arg3[%c0_3, %c0_4], %3 {strides = array<i32>} : memref<32x128xbf16, #tpu.memory_space<vmem>>, vector<32x128xbf16>,
    %cst_5 = arith.constant dense<0.000000e+00> : vector<128xf32>
    %5 = vector.multi_reduction <add>, %2, %cst_5 [0] : vector<32x128xf32> to vector<128xf32>
    %6 = vector.shape_cast %5 : vector<128xf32> to vector<1x128xf32>
    %cst_6 = arith.constant 3.125000e-02 : f32
    %7 = vector.broadcast %cst_6 : f32 to vector<1x128xf32>
    %8 = arith.mulf %6, %7 : vector<1x128xf32>
    %9 = vector.broadcast %8 : vector<1x128xf32> to vector<32x128xf32>
    %10 = arith.subf %2, %9 : vector<32x128xf32>
    %11 = arith.mulf %10, %10 : vector<32x128xf32>
    %cst_7 = arith.constant dense<0.000000e+00> : vector<128xf32>
    %12 = vector.multi_reduction <add>, %11, %cst_7 [0] : vector<32x128xf32> to vector<128xf32>
    %13 = vector.shape_cast %12 : vector<128xf32> to vector<1x128xf32>
    %14 = tpu.concatenate %6, %13 in 0 : vector<1x128xf32>, vector<1x128xf32> -> vector<2x128xf32>
    %c0_8 = arith.constant 0 : index
    %c0_9 = arith.constant 0 : index
    %c0_10 = arith.constant 0 : index
    %15 = vector.load %arg4[%c0_8, %c0_9, %c0_10] : memref<1x2x128xf32, #tpu.memory_space<vmem>>, vector<1x2x128xf32>
    %16 = vector.shape_cast %15 : vector<1x2x128xf32> to vector<2x128xf32>
    %17 = vector.shape_cast %14 : vector<2x128xf32> to vector<1x2x128xf32>
    tpu.vector_store %arg4[%c0_8, %c0_9, %c0_10], %17 {strides = array<i32>} : memref<1x2x128xf32, #tpu.memory_space<vmem>>, vector<1x2x128xf32>,
    return
  }
  func.func @transform_0(%arg0: i32) -> (i32, i32) {
    %c0_i32 = arith.constant 0 : i32
    %c0_i32_0 = arith.constant 0 : i32
    return %arg0, %c0_i32 : i32, i32
  }
  func.func @transform_1(%arg0: i32) -> (i32, i32) {
    %c0_i32 = arith.constant 0 : i32
    %c0_i32_0 = arith.constant 0 : i32
    %c0_i32_1 = arith.constant 0 : i32
    return %c0_i32, %c0_i32_0 : i32, i32
  }
  func.func @transform_2(%arg0: i32) -> (i32, i32) {
    %c0_i32 = arith.constant 0 : i32
    %c0_i32_0 = arith.constant 0 : i32
    return %arg0, %c0_i32 : i32, i32
  }
  func.func @transform_3(%arg0: i32) -> (i32, i32, i32) {
    %c0_i32 = arith.constant 0 : i32
    %c0_i32_0 = arith.constant 0 : i32
    %c0_i32_1 = arith.constant 0 : i32
    return %arg0, %c0_i32, %c0_i32_0 : i32, i32, i32
  }
}

</mosaic_0001>

<bundles_post_ra>
// kernel: tpu_custom_call.1
= control target key start
LH: loop header
LB: loop body
LE: loop exit
PB: predicated region body
PF: predicated region fallthrough
CT: control target
= control target key end

     0   :  { %9 = vsyncpa [#allocation3], 0  ;;  %s446_s0 = inlined_call_operand.hbm [shape: bf16[32,128], index: 0, kind: input, shape index: {}]   ;;  %s447_s1 = inlined_call_operand.hbm [shape: bf16[128,128], index: 1, kind: input, shape index: {}]   ;;  %s448_s2 = inlined_call_operand.hbm [shape: bf16[32,128], index: 2, kind: output, shape index: {0}]   ;;  %s449_s3 = inlined_call_operand.hbm [shape: f32[1,2,128], index: 3, kind: output, shape index: {1}]  }
   0x1   :  { %10 = vsyncpa [#allocation6], 0 }
   0x2   :  { %11 = vsyncpa [#allocation4], 0 }
   0x3   :  { %12 = vsyncpa [#allocation9], 0  ;;  %s17_s14 = sshll.u32 %s446_s0, 4  ;;  %s399_s15 = smov [#allocation2]   ;;  %s18_s14 = int_to_ptr.hbm [resolvable:$true] %s17_s14 }
   0x4   :  { %s19_s16 = sshll.u32 %s399_s15, 4  ;;  %s30_s19 = sshll.u32 %s447_s1, 4  ;;  %s20_s16 = int_to_ptr.vmem [resolvable:$true] %s19_s16  ;;  %s31_s19 = int_to_ptr.hbm [resolvable:$true] %s30_s19 }
   0x5   :  { %s400_s20 = smov 64   ;;  %s401_s21 = smov 4  }
   0x6   :  { %25 = dma.hbm_to_vmem [thread:$0]  %s18_s14, 256, %s20_s16, [#allocation3], %s400_s20, %s400_s20, %s401_s21  }
   0x7   :  { %s402_s22 = smov [#allocation5]  }
   0x8   :  { %s32_s23 = sshll.u32 %s402_s22, 4  ;;  %s33_s23 = int_to_ptr.vmem [resolvable:$true] %s32_s23 }
   0x9   :  { %38 = dma.hbm_to_vmem [thread:$0]  %s31_s19, 1024, %s33_s23, [#allocation6], %s400_s20, %s400_s20, %s401_s21  }
   0xa   :  { %391 = dma.done.wait [#allocation3], 256  }
   0xb   :  { %392 = vsyncadd [#allocation3], 4294967040 }
   0xc   :  { %393 = dma.done.wait [#allocation6], 1024  }
   0xd   :  { %394 = vsyncadd [#allocation6], 4294966272  ;;  %v269_v0 = vld [vmem:[#allocation5 + $0x38] sm:$0xff]  ;;  %v268_v1 = vld [vmem:[#allocation5 + $0x30] sm:$0xff]  ;;  %s403_s0 = smov [#allocation7]   ;;  %s190_s26 = sshll.u32 %s448_s2, 4  ;;  %s191_s26 = int_to_ptr.hbm [resolvable:$true] %s190_s26 }
   0xe   :  { %127 = vmatpush.bf16.msra.mxu0 %v269_v0  ;;  %281 = vmatpush.bf16.msra.mxu1 %v269_v0  ;;  %v267_v2 = vld [vmem:[#allocation5 + $0x28] sm:$0xff]  ;;  %v266_v3 = vld [vmem:[#allocation5 + $0x20] sm:$0xff]  ;;  %v265_v4 = vld [vmem:[#allocation5 + $0x18] sm:$0xff]  ;;  %s188_s1 = sshll.u32 %s403_s0, 4  ;;  %s404_s2 = smov [#allocation8]   ;;  %vm181_vm0 = vcmask 1040384   ;;  %s189_s1 = int_to_ptr.vmem [resolvable:$true] %s188_s1 }
   0xf   :  { %v264_v5 = vld [vmem:[#allocation5 + $0x10] sm:$0xff]  ;;  %v263_v6 = vld [vmem:[#allocation5 + $0x8] sm:$0xff]  ;;  %v262_v7 = vld [vmem:[#allocation5] sm:$0xff]  ;;  %s202_s27 = sshll.u32 %s404_s2, 4  ;;  %s204_s30 = sshll.u32 %s449_s3, 4  ;;  %s203_s27 = int_to_ptr.vmem [resolvable:$true] %s202_s27  ;;  %s205_s30 = int_to_ptr.hbm [resolvable:$true] %s204_s30 }
  0x10   :  { %v260_v8 = vld [vmem:[#allocation2] sm:$0xff]  ;;  %v261_v9 = vld [vmem:[#allocation2 + $0x8] sm:$0xff] }
  0x12   :  { %128 = vmatpush.bf16.msra.mxu0 %v268_v1  ;;  %282 = vmatpush.bf16.msra.mxu1 %v268_v1 }
  0x16   :  { %129 = vmatpush.bf16.msra.mxu0 %v267_v2  ;;  %283 = vmatpush.bf16.msra.mxu1 %v267_v2 }
  0x1a   :  { %130 = vmatpush.bf16.msra.mxu0 %v266_v3  ;;  %284 = vmatpush.bf16.msra.mxu1 %v266_v3 }
  0x1e   :  { %131 = vmatpush.bf16.msra.mxu0 %v265_v4  ;;  %285 = vmatpush.bf16.msra.mxu1 %v265_v4 }
  0x22   :  { %132 = vmatpush.bf16.msra.mxu0 %v264_v5  ;;  %286 = vmatpush.bf16.msra.mxu1 %v264_v5 }
  0x26   :  { %133 = vmatpush.bf16.msra.mxu0 %v263_v6  ;;  %287 = vmatpush.bf16.msra.mxu1 %v263_v6 }
  0x2a   :  { %134 = vmatpush.bf16.msra.mxu0 %v262_v7  ;;  %288 = vmatpush.bf16.msra.mxu1 %v262_v7 }
  0x2d   :  { %135 = vmatmul.bf16.vlgmr.msra.gmra.mxu0 %v260_v8  ;;  %140 = vmatmul.bf16.vlgmr.msra.gmra.mxu1 %v261_v9 }
  0xaa   :  { %v136_v10 = vpop.f32.mrf.mxu0  ;;  %v141_v11 = vpop.f32.mrf.mxu1 }
  0xb2   :  { %v138_v12 = vpop.f32.mrf.mxu0  ;;  %v143_v13 = vpop.f32.mrf.mxu1 }
  0xb3   :  { %v273_v14 = vpack.c.bf16 %v138_v12, %v136_v10  ;;  %v154_v15 = vadd.f32 %v138_v12, %v136_v10  ;;  %v278_v16 = vpack.c.bf16 %v143_v13, %v141_v11 }
  0xb5   :  { %274 = vst [vmem:[#allocation7] sm:$0xff] %v273_v14   ;;  %v155_v17 = vadd.f32 %v154_v15, %v141_v11 }
  0xb6   :  { %280 = vst [vmem:[#allocation7 + $0x8] sm:$0xff] %v278_v16  }
  0xb7   :  { %v156_v18 = vadd.f32 %v155_v17, %v143_v13  ;;  %196 = dma.vmem_to_hbm [thread:$0]  %s189_s1, 256, %s191_s26, [#allocation4], %s400_s20, %s400_s20, %s401_s21  }
  0xb9   :  { %v157_v19 = vrot.slane %v156_v18, 4 }
  0xbb   :  { %v158_v20 = vadd.f32 %v157_v19, %v156_v18 }
  0xbd   :  { %v159_v21 = vrot.slane %v158_v20, 2 }
  0xbf   :  { %v160_v22 = vadd.f32 %v159_v21, %v158_v20 }
  0xc1   :  { %v161_v23 = vrot.slane %v160_v22, 1 }
  0xc3   :  { %v162_v24 = vadd.f32 %v161_v23, %v160_v22 }
  0xc5   :  { %v163_v25 = vmul.f32 0.03125, %v162_v24 }
  0xc7   :  { %v164_v26 = vsub.f32 %v136_v10, %v163_v25  ;;  %v165_v27 = vsub.f32 %v138_v12, %v163_v25  ;;  %v166_v28 = vsub.f32 %v141_v11, %v163_v25  ;;  %v167_v29 = vsub.f32 %v143_v13, %v163_v25 }
  0xc9   :  { %v168_v30 = vmul.f32 %v164_v26, %v164_v26  ;;  %v169_v31 = vmul.f32 %v165_v27, %v165_v27  ;;  %v170_v32 = vmul.f32 %v166_v28, %v166_v28  ;;  %v171_v34 = vmul.f32 %v167_v29, %v167_v29 }
  0xcb   :  { %v172_v33 = vadd.f32 %v169_v31, %v168_v30 }
  0xcd   :  { %v173_v35 = vadd.f32 %v172_v33, %v170_v32 }
  0xcf   :  { %v174_v36 = vadd.f32 %v173_v35, %v171_v34 }
  0xd1   :  { %v175_v37 = vrot.slane %v174_v36, 4 }
  0xd3   :  { %v176_v38 = vadd.f32 %v175_v37, %v174_v36 }
  0xd5   :  { %v177_v39 = vrot.slane %v176_v38, 2 }
  0xd7   :  { %v178_v40 = vadd.f32 %v177_v39, %v176_v38 }
  0xd9   :  { %v179_v41 = vrot.slane %v178_v40, 1 }
  0xdb   :  { %v180_v42 = vadd.f32 %v179_v41, %v178_v40 }
  0xdd   :  { %v182_v43 = vsel %vm181_vm0, %v162_v24, %v180_v42 }
  0xde   :  { %183 = vst [vmem:[#allocation8] sm:$0x3] %v182_v43 }
  0xdf   :  { %207 = dma.vmem_to_hbm [thread:$0]  %s203_s27, 32, %s205_s30, [#allocation9]  }
  0xe0   :  { %395 = dma.done.wait [#allocation4], 256  }
  0xe1   :  { %396 = vsyncadd [#allocation4], 4294967040 }
  0xe2   :  { %397 = dma.done.wait [#allocation9], 32  }
  0xe3   :  { %398 = vsyncadd [#allocation9], 4294967264 }
  0xe4   :  { %216 = vsyncpa [#allocation3], 1 }
  0xe5   :  { %217 = vsyncpa [#allocation6], 1 }
  0xe6   :  { %218 = vsyncpa [#allocation4], 1 }
  0xe7   :  { %219 = vsyncpa [#allocation9], 1 }

</bundles_post_ra>
